<compile_context>
chip_gen: v7x
topology: tpu7x:2x2x1
jax: 0.10.0
libtpu: 0.0.40
codegen_flags: <defaults>
</compile_context>

<pallas_src>
import functools

import jax
import jax.numpy as jnp
from jax import lax
from jax.experimental import pallas as pl
from jax.experimental.pallas import tpu as pltpu


def _deconv_relu_kernel(x_ref, w_ref, b_ref, o_ref):
    # x_ref: (Cin, tm)   voxel tile, channels on the sublane axis
    # w_ref: (Cin, Ncp)  flattened (and column-padded) ConvTranspose3d weight
    # b_ref: (1, Ncp)    per-column bias (bias repeated over the k^3 taps, padded)
    # o_ref: (tm, Ncp)   lane-dense output tile
    acc = lax.dot_general(
        x_ref[...], w_ref[...],
        dimension_numbers=(((0,), (0,)), ((), ())),   # contract Cin on axis 0 of both
        preferred_element_type=jnp.float32,
    )
    acc = acc + b_ref[...]
    o_ref[...] = jnp.maximum(acc, 0.0).astype(o_ref.dtype)


def _round_up(a, b):
    return -(-a // b) * b


def _pick_tm(tm_desired, m_s, cin, ncp, dtype_bytes=4, budget_bytes=10 * 1024 * 1024):
    """Largest 128-multiple row tile that fits a conservative double-buffered VMEM budget."""
    tm = max(128, (tm_desired // 128) * 128)
    tm = min(tm, _round_up(m_s, 128))          # no point tiling wider than the row count
    while tm > 128:
        # double-buffered x tile + out tile + (constant) weight + bias blocks
        need = 2 * (cin * tm + tm * ncp + cin * ncp + ncp) * dtype_bytes
        if need <= budget_bytes:
            break
        tm //= 2
    return tm


def upsampling_deconv_block(x, weight, bias, *, stride=2, tm=1024):
    """ConvTranspose3d(kernel=stride, stride=stride, padding=0) + ReLU.

    x:      (N, Cin, D, H, W)    float32  (PyTorch NCDHW layout)
    weight: (Cin, Cout, k, k, k) float32  (PyTorch ConvTranspose3d weight layout)
    bias:   (Cout,)              float32
    returns (N, Cout, D*k, H*k, W*k)
    """
    k = stride
    N, Cin, D, H, W = x.shape
    Cin_w, Cout = weight.shape[0], weight.shape[1]
    assert Cin_w == Cin and weight.shape[2:] == (k, k, k)

    Ms = D * H * W                      # voxels per batch element
    Nc = Cout * k ** 3                  # output taps per voxel
    Ncp = _round_up(Nc, 128)            # lane-dense column count

    tm_eff = _pick_tm(tm, Ms, Cin, Ncp)
    Msp = _round_up(Ms, tm_eff)         # row-padded voxel count

    # ---- inputs: keep NCDHW, only free reshapes (+ zero padding when shapes are ragged)
    x3 = x.reshape(N, Cin, Ms)          # contiguous reshape -> no HBM transpose
    if Msp != Ms:
        x3 = jnp.pad(x3, ((0, 0), (0, 0), (0, Msp - Ms)))

    w_flat = weight.reshape(Cin, Nc)                    # column order: (Cout major, k,k,k)
    b_rep = jnp.repeat(bias, k ** 3).reshape(1, Nc)     # matches the column order above
    if Ncp != Nc:
        w_flat = jnp.pad(w_flat, ((0, 0), (0, Ncp - Nc)))
        b_rep = jnp.pad(b_rep, ((0, 0), (0, Ncp - Nc)))
    w_flat = w_flat.astype(x.dtype)
    b_rep = b_rep.astype(x.dtype)

    grid = (N, Msp // tm_eff)

    itemsize = jnp.dtype(x.dtype).itemsize
    cost = pl.CostEstimate(
        flops=2 * N * Msp * Cin * Ncp,
        transcendentals=0,
        bytes_accessed=(x3.size + w_flat.size + b_rep.size + N * Msp * Ncp) * itemsize,
    )

    y_flat = pl.pallas_call(
        _deconv_relu_kernel,
        out_shape=jax.ShapeDtypeStruct((N, Msp, Ncp), x.dtype),
        grid_spec=pltpu.PrefetchScalarGridSpec(
            num_scalar_prefetch=0,
            grid=grid,
            in_specs=[
                # (Cin, tm) voxel tile read directly from the NCDHW-flattened input
                pl.BlockSpec((None, Cin, tm_eff), lambda n, i: (n, 0, i)),
                # full weight / bias blocks, constant across the grid
                pl.BlockSpec((Cin, Ncp), lambda n, i: (0, 0)),
                pl.BlockSpec((1, Ncp), lambda n, i: (0, 0)),
            ],
            out_specs=pl.BlockSpec((None, tm_eff, Ncp), lambda n, i: (n, i, 0)),
        ),
        compiler_params=pltpu.CompilerParams(
            dimension_semantics=("parallel", "parallel"),
        ),
        cost_estimate=cost,
    )(x3, w_flat, b_rep)

    # ---- glue: drop padding and scatter each voxel's k^3 block into the upsampled volume
    y = y_flat[:, :Ms, :Nc].reshape(N, D, H, W, Cout, k, k, k)
    y = jnp.transpose(y, (0, 4, 1, 5, 2, 6, 3, 7))      # (N, Cout, D, k, H, k, W, k)
    return y.reshape(N, Cout, D * k, H * k, W * k)


def _reference(x, weight, bias, stride=2):
    # pure-JAX reference: einsum form of the non-overlapping transposed conv + ReLU
    k = stride
    N, Cin, D, H, W = x.shape
    Cout = weight.shape[1]
    y = jnp.einsum("ncdhw,coxyz->ndhwoxyz", x, weight,
                   precision=lax.Precision.HIGHEST)
    y = y + bias.reshape(1, 1, 1, 1, Cout, 1, 1, 1)
    y = jnp.transpose(y, (0, 4, 1, 5, 2, 6, 3, 7))
    y = y.reshape(N, Cout, D * k, H * k, W * k)
    return jnp.maximum(y, 0.0)


if __name__ == "__main__":
    key = jax.random.PRNGKey(0)

    def make_case(case_key, N, Cin, Cout, D, H, W, stride):
        k_x, k_w, k_b = jax.random.split(case_key, 3)
        x = jax.random.normal(k_x, (N, Cin, D, H, W), dtype=jnp.float32)
        fan_in = Cin * stride ** 3
        bound = 1.0 / (fan_in ** 0.5)
        weight = jax.random.uniform(
            k_w, (Cin, Cout, stride, stride, stride), jnp.float32, -bound, bound
        )
        bias = jax.random.uniform(k_b, (Cout,), jnp.float32, -bound, bound)
        return x, weight, bias

    cases = [
        # lane-dense already (Cout*8 = 128), spatial size divides the row tile
        dict(N=2, Cin=16, Cout=16, D=8, H=8, W=8, stride=2),
        # narrow Cout (needs column padding) and odd spatial sizes (needs row padding)
        dict(N=2, Cin=4, Cout=8, D=5, H=6, W=7, stride=2),
    ]

    case_keys = jax.random.split(key, len(cases))
    for case_key, cfg in zip(case_keys, cases):
        x, weight, bias = make_case(case_key, **cfg)
        stride = cfg["stride"]
        fn = jax.jit(functools.partial(upsampling_deconv_block, stride=stride))
        out = jax.block_until_ready(fn(x, weight, bias))
        ref = _reference(x, weight, bias, stride=stride)
        expected_shape = (cfg["N"], cfg["Cout"],
                          cfg["D"] * stride, cfg["H"] * stride, cfg["W"] * stride)
        assert out.shape == expected_shape, out.shape
        assert jnp.allclose(out, ref, atol=1e-4, rtol=1e-4), "mismatch vs reference"

    print("KERNEL_OK")
</pallas_src>

<mosaic_0001>
module attributes {stable_mosaic.version = 11 : i64} {
  func.func @_deconv_relu_kernel(%arg0: i32, %arg1: i32, %arg2: memref<1x16x512xf32, #tpu.memory_space<vmem>>, %arg3: memref<16x128xf32, #tpu.memory_space<vmem>>, %arg4: memref<1x128xf32, #tpu.memory_space<vmem>>, %arg5: memref<1x512x128xf32, #tpu.memory_space<vmem>>) attributes {dimension_semantics = [#tpu.dimension_semantics<parallel>, #tpu.dimension_semantics<parallel>], iteration_bounds = array<i64: 2, 1>, scalar_prefetch = 0 : i64, scratch_operands = 0 : i64, tpu.core_type = #tpu.core_type<tc>, window_params = [{transform_indices = @transform_0, window_bounds = array<i64: 1, 16, 512>}, {pipeline_mode = #tpu.pipeline_mode<synchronous>, transform_indices = @transform_1, window_bounds = array<i64: 16, 128>}, {pipeline_mode = #tpu.pipeline_mode<synchronous>, transform_indices = @transform_2, window_bounds = array<i64: 1, 128>}, {transform_indices = @transform_3, window_bounds = array<i64: 1, 512, 128>}]} {
    %c0 = arith.constant 0 : index
    %c0_0 = arith.constant 0 : index
    %c0_1 = arith.constant 0 : index
    %0 = vector.load %arg2[%c0, %c0_0, %c0_1] : memref<1x16x512xf32, #tpu.memory_space<vmem>>, vector<1x16x512xf32>
    %1 = vector.shape_cast %0 : vector<1x16x512xf32> to vector<16x512xf32>
    %c0_2 = arith.constant 0 : index
    %c0_3 = arith.constant 0 : index
    %2 = vector.load %arg3[%c0_2, %c0_3] : memref<16x128xf32, #tpu.memory_space<vmem>>, vector<16x128xf32>
    %cst = arith.constant dense<0.000000e+00> : vector<512x128xf32>
    %3 = tpu.matmul %1, %2, %cst {dimension_numbers = #tpu.dot_dimension_numbers<[0], [0], [1], [1], [0, 1, 1, 1], [], []>} : vector<16x512xf32>, vector<16x128xf32>, vector<512x128xf32> -> vector<512x128xf32>
    %c0_4 = arith.constant 0 : index
    %c0_5 = arith.constant 0 : index
    %4 = vector.load %arg4[%c0_4, %c0_5] : memref<1x128xf32, #tpu.memory_space<vmem>>, vector<1x128xf32>
    %5 = vector.broadcast %4 : vector<1x128xf32> to vector<512x128xf32>
    %6 = arith.addf %3, %5 : vector<512x128xf32>
    %cst_6 = arith.constant 0.000000e+00 : f32
    %7 = vector.broadcast %cst_6 : f32 to vector<512x128xf32>
    %8 = arith.maximumf %6, %7 : vector<512x128xf32>
    %c0_7 = arith.constant 0 : index
    %c0_8 = arith.constant 0 : index
    %c0_9 = arith.constant 0 : index
    %9 = vector.load %arg5[%c0_7, %c0_8, %c0_9] : memref<1x512x128xf32, #tpu.memory_space<vmem>>, vector<1x512x128xf32>
    %10 = vector.shape_cast %9 : vector<1x512x128xf32> to vector<512x128xf32>
    %11 = vector.shape_cast %8 : vector<512x128xf32> to vector<1x512x128xf32>
    tpu.vector_store %arg5[%c0_7, %c0_8, %c0_9], %11 {strides = array<i32>} : memref<1x512x128xf32, #tpu.memory_space<vmem>>, vector<1x512x128xf32>,
    return
  }
  func.func @transform_0(%arg0: i32, %arg1: i32) -> (i32, i32, i32) {
    %c0_i32 = arith.constant 0 : i32
    %c0_i32_0 = arith.constant 0 : i32
    return %arg0, %c0_i32, %arg1 : i32, i32, i32
  }
  func.func @transform_1(%arg0: i32, %arg1: i32) -> (i32, i32) {
    %c0_i32 = arith.constant 0 : i32
    %c0_i32_0 = arith.constant 0 : i32
    %c0_i32_1 = arith.constant 0 : i32
    return %c0_i32, %c0_i32_0 : i32, i32
  }
  func.func @transform_2(%arg0: i32, %arg1: i32) -> (i32, i32) {
    %c0_i32 = arith.constant 0 : i32
    %c0_i32_0 = arith.constant 0 : i32
    %c0_i32_1 = arith.constant 0 : i32
    return %c0_i32, %c0_i32_0 : i32, i32
  }
  func.func @transform_3(%arg0: i32, %arg1: i32) -> (i32, i32, i32) {
    %c0_i32 = arith.constant 0 : i32
    %c0_i32_0 = arith.constant 0 : i32
    return %arg0, %arg1, %c0_i32 : i32, i32, i32
  }
}

</mosaic_0001>

<bundles_post_ra>
// kernel: upsampling_deconv_block.1
= control target key start
LH: loop header
LB: loop body
LE: loop exit
PB: predicated region body
PF: predicated region fallthrough
CT: control target
= control target key end

     0   :  { %s1467_s12 = smov 0   ;;  %s1469_s13 = smov 0   ;;  %s1709_s0 = inlined_call_operand.vmem [shape: f32[2,16,512], index: 0, kind: input, shape index: {}]   ;;  %s1710_s1 = inlined_call_operand.vmem [shape: f32[16,128], index: 1, kind: input, shape index: {}]   ;;  %s1711_s2 = inlined_call_operand.vmem [shape: f32[1,128], index: 2, kind: input, shape index: {}]   ;;  %s1712_s3 = inlined_call_operand.vmem [shape: f32[2,512,128], index: 3, kind: output, shape index: {}]  }
   0x1   :  { %s1471_s14 = smov 0  }
   0x2 LB: > { %s25_s15 = sadd.s32 1, %s1441_s13  ;;  %p1152_p0 = scmp.ge.s32.totalorder %s1445_s14, 1  ;;  %s1445_s14 = sphi %s1471_s14, %s13_s14   ;;  %s1441_s13 = sphi %s1469_s13, %s1714_s13   ;;  %s1437_s12 = sphi %s1467_s12, %s1713_s12  }
   0x3   : > { %p27_p1 = scmp.ge.s32.totalorder %s25_s15, 2  ;;  %p158_p2 = scmp.lt.s32.totalorder %s1445_s14, 3 }
   0x5   : > { %s1716_s15 = smov (%p27_p1, %s25_s15), 0  ;;  %p159_p3 = pnand %p1152_p0, %p158_p2 }
   0x6   : > { %p191_p4 = scmp.lt.s32.totalorder (!%p159_p3), %s1437_s12, 1  ;;  %v218_v0 = vld [vmem:[%s1710_s1] sm:$0xff] (!%p159_p3)  ;;  %v219_v1 = vld [vmem:[%s1710_s1 + $0x8] sm:$0xff] (!%p159_p3)  ;;  %vm355_vm0 = vcmask (!%p159_p3), 130048  }
   0x7   : > { %162 = sbr.rel (%p159_p3) target bundleno = 489 (0x1e9), region = 32  ;;  %v1392_v4 = vpack.c.bf16 (!%p159_p3), %v219_v1, %v218_v0 }
   0x9   : > { %1393 = vmatprep.subr.bf16.mxu0 (!%p159_p3), %v1392_v4  ;;  %1396 = vmatprep.subr.bf16.mxu1 (!%p159_p3), %v1392_v4 }
   0xa   : > { %1395 = vmatpush3.bf16.msra.mxu0 (!%p159_p3), %v1392_v4  ;;  %1397 = vmatpush3.bf16.msra.mxu1 (!%p159_p3), %v1392_v4 }
   0xe   : > { %s1718_s12 = smov (!%p191_p4, %s1437_s12), 1 }
   0xf   : > { %s1224_s16 = sshll.u32 %s1718_s12, 6  ;;  %s1225_s26 = sshll.u32 %s1718_s12, 9 }
  0x10   : > { %s198_s19 = scalar_lea.vmem %s1709_s0, %s1224_s16  ;;  %s1572_s29 = scalar_lea.vmem %s1712_s3, %s1225_s26 }
  0x11   : > { %v212_v2 = vld [vmem:[%s198_s19 + $0x10] sm:$0xff]  ;;  %v210_v3 = vld [vmem:[%s198_s19] sm:$0xff]  ;;  %v213_v7 = vld [vmem:[%s198_s19 + $0x18] sm:$0xff] }
  0x12   : > { %291 = vxpose.xlu1.b32.start [1/2] (short) %v212_v2, 128  ;;  %227 = vxpose.xlu0.b32.start [1/2] (short) %v210_v3, 128  ;;  %v216_v5 = vld [vmem:[%s198_s19 + $0x30] sm:$0xff]  ;;  %v214_v6 = vld [vmem:[%s198_s19 + $0x20] sm:$0xff]  ;;  %v211_v8 = vld [vmem:[%s198_s19 + $0x8] sm:$0xff] }
  0x13   : > { %v217_v9 = vld [vmem:[%s198_s19 + $0x38] sm:$0xff]  ;;  %v215_v10 = vld [vmem:[%s198_s19 + $0x28] sm:$0xff] }
  0x16   : > { %292 = vxpose.xlu1.b32.end [2/2] (short) %v216_v5, 128  ;;  %228 = vxpose.xlu0.b32.end [2/2] (short) %v214_v6, 128 }
  0x4f   : > { %323 = vxpose.xlu1.b32.start [1/2] (short) %v213_v7, 128  ;;  %259 = vxpose.xlu0.b32.start [1/2] (short) %v211_v8, 128 }
  0x53   : > { %324 = vxpose.xlu1.b32.end [2/2] (short) %v217_v9, 128  ;;  %260 = vxpose.xlu0.b32.end [2/2] (short) %v215_v10, 128 }
  0x92   : > { %v307_v11 = vpop.trf.xlu1  ;;  %v243_v12 = vpop.trf.xlu0 }
  0x93   : > { %1296 = vmatprep.mubr.msk.f32.mxu0 %vm355_vm0, %v243_v12  ;;  %1344 = vmatprep.mubr.msk.f32.mxu1 %vm355_vm0, %v307_v11  ;;  %v1564_v11 = vld [vmem:[%s1711_s2] ss:$0 sm:$0xff] }
  0x96   : > { %v308_v13 = vpop.trf.xlu1  ;;  %v244_v14 = vpop.trf.xlu0 }
  0x97   : > { %1297 = vmatmul.mubr.msk.f32.vlgmr.msra.gmra.mrb[0].mxu0 %vm355_vm0, %v244_v14  ;;  %1345 = vmatmul.mubr.msk.f32.vlgmr.msra.gmra.mrb[0].mxu1 %vm355_vm0, %v308_v13 }
  0x9a   : > { %v309_v15 = vpop.trf.xlu1  ;;  %v245_v16 = vpop.trf.xlu0 }
  0x9b   : > { %1299 = vmatprep.mubr.msk.f32.mxu0 %vm355_vm0, %v245_v16  ;;  %1347 = vmatprep.mubr.msk.f32.mxu1 %vm355_vm0, %v309_v15 }
  0x9e   : > { %v310_v17 = vpop.trf.xlu1  ;;  %v246_v18 = vpop.trf.xlu0 }
  0x9f   : > { %1300 = vmatmul.mubr.msk.f32.gmra.mrb[2].mxu0 %vm355_vm0, %v246_v18  ;;  %1348 = vmatmul.mubr.msk.f32.gmra.mrb[2].mxu1 %vm355_vm0, %v310_v17 }
  0xa2   : > { %v311_v19 = vpop.trf.xlu1  ;;  %v247_v20 = vpop.trf.xlu0 }
  0xa3   : > { %1302 = vmatprep.mubr.msk.f32.mxu0 %vm355_vm0, %v247_v20  ;;  %1350 = vmatprep.mubr.msk.f32.mxu1 %vm355_vm0, %v311_v19 }
  0xa6   : > { %v312_v21 = vpop.trf.xlu1  ;;  %v248_v22 = vpop.trf.xlu0 }
  0xa7   : > { %1303 = vmatmul.mubr.msk.f32.gmra.mrb[4].mxu0 %vm355_vm0, %v248_v22  ;;  %1351 = vmatmul.mubr.msk.f32.gmra.mrb[4].mxu1 %vm355_vm0, %v312_v21 }
  0xaa   : > { %v313_v23 = vpop.trf.xlu1  ;;  %v249_v24 = vpop.trf.xlu0 }
  0xab   : > { %1305 = vmatprep.mubr.msk.f32.mxu0 %vm355_vm0, %v249_v24  ;;  %1353 = vmatprep.mubr.msk.f32.mxu1 %vm355_vm0, %v313_v23 }
  0xae   : > { %v314_v25 = vpop.trf.xlu1  ;;  %v250_v26 = vpop.trf.xlu0 }
  0xaf   : > { %1306 = vmatmul.mubr.msk.f32.gmra.mrb[6].mxu0 %vm355_vm0, %v250_v26  ;;  %1354 = vmatmul.mubr.msk.f32.gmra.mrb[6].mxu1 %vm355_vm0, %v314_v25 }
  0xb2   : > { %v315_v27 = vpop.trf.xlu1  ;;  %v251_v28 = vpop.trf.xlu0 }
  0xb3   : > { %1308 = vmatprep.mubr.msk.f32.mxu0 %vm355_vm0, %v251_v28  ;;  %1356 = vmatprep.mubr.msk.f32.mxu1 %vm355_vm0, %v315_v27 }
  0xb6   : > { %v316_v29 = vpop.trf.xlu1  ;;  %v252_v30 = vpop.trf.xlu0 }
  0xb7   : > { %1309 = vmatmul.mubr.msk.f32.gmra.mrb[8].mxu0 %vm355_vm0, %v252_v30  ;;  %1357 = vmatmul.mubr.msk.f32.gmra.mrb[8].mxu1 %vm355_vm0, %v316_v29 }
  0xba   : > { %v317_v31 = vpop.trf.xlu1  ;;  %v253_v32 = vpop.trf.xlu0 }
  0xbb   : > { %1311 = vmatprep.mubr.msk.f32.mxu0 %vm355_vm0, %v253_v32  ;;  %1359 = vmatprep.mubr.msk.f32.mxu1 %vm355_vm0, %v317_v31 }
  0xbe   : > { %v318_v33 = vpop.trf.xlu1  ;;  %v254_v34 = vpop.trf.xlu0 }
  0xbf   : > { %1312 = vmatmul.mubr.msk.f32.gmra.mrb[10].mxu0 %vm355_vm0, %v254_v34  ;;  %1360 = vmatmul.mubr.msk.f32.gmra.mrb[10].mxu1 %vm355_vm0, %v318_v33 }
  0xc2   : > { %v319_v35 = vpop.trf.xlu1  ;;  %v255_v36 = vpop.trf.xlu0 }
  0xc3   : > { %1314 = vmatprep.mubr.msk.f32.mxu0 %vm355_vm0, %v255_v36  ;;  %1362 = vmatprep.mubr.msk.f32.mxu1 %vm355_vm0, %v319_v35 }
  0xc6   : > { %v320_v37 = vpop.trf.xlu1  ;;  %v256_v38 = vpop.trf.xlu0 }
  0xc7   : > { %1315 = vmatmul.mubr.msk.f32.gmra.mrb[12].mxu0 %vm355_vm0, %v256_v38  ;;  %1363 = vmatmul.mubr.msk.f32.gmra.mrb[12].mxu1 %vm355_vm0, %v320_v37 }
  0xca   : > { %v321_v39 = vpop.trf.xlu1  ;;  %v257_v40 = vpop.trf.xlu0 }
  0xcb   : > { %1317 = vmatprep.mubr.msk.f32.mxu0 %vm355_vm0, %v257_v40  ;;  %1365 = vmatprep.mubr.msk.f32.mxu1 %vm355_vm0, %v321_v39 }
  0xce   : > { %v322_v41 = vpop.trf.xlu1  ;;  %v258_v42 = vpop.trf.xlu0 }
  0xcf   : > { %1318 = vmatmul.mubr.msk.f32.gmra.mrb[14].mxu0 %vm355_vm0, %v258_v42  ;;  %1366 = vmatmul.mubr.msk.f32.gmra.mrb[14].mxu1 %vm355_vm0, %v322_v41 }
  0xd2   : > { %v339_v43 = vpop.trf.xlu1  ;;  %v275_v44 = vpop.trf.xlu0 }
  0xd3   : > { %1320 = vmatprep.mubr.msk.f32.mxu0 %vm355_vm0, %v275_v44  ;;  %1368 = vmatprep.mubr.msk.f32.mxu1 %vm355_vm0, %v339_v43 }
  0xd6   : > { %v340_v45 = vpop.trf.xlu1  ;;  %v276_v46 = vpop.trf.xlu0 }
  0xd7   : > { %1321 = vmatmul.mubr.msk.f32.gmra.mrb[16].mxu0 %vm355_vm0, %v276_v46  ;;  %1369 = vmatmul.mubr.msk.f32.gmra.mrb[16].mxu1 %vm355_vm0, %v340_v45 }
  0xda   : > { %v341_v47 = vpop.trf.xlu1  ;;  %v277_v48 = vpop.trf.xlu0 }
  0xdb   : > { %1323 = vmatprep.mubr.msk.f32.mxu0 %vm355_vm0, %v277_v48  ;;  %1371 = vmatprep.mubr.msk.f32.mxu1 %vm355_vm0, %v341_v47 }
  0xde   : > { %v342_v49 = vpop.trf.xlu1  ;;  %v278_v50 = vpop.trf.xlu0 }
  0xdf   : > { %1324 = vmatmul.mubr.msk.f32.gmra.mrb[18].mxu0 %vm355_vm0, %v278_v50  ;;  %1372 = vmatmul.mubr.msk.f32.gmra.mrb[18].mxu1 %vm355_vm0, %v342_v49 }
  0xe2   : > { %v343_v51 = vpop.trf.xlu1  ;;  %v279_v52 = vpop.trf.xlu0 }
  0xe3   : > { %1326 = vmatprep.mubr.msk.f32.mxu0 %vm355_vm0, %v279_v52  ;;  %1374 = vmatprep.mubr.msk.f32.mxu1 %vm355_vm0, %v343_v51 }
  0xe6   : > { %v344_v53 = vpop.trf.xlu1  ;;  %v280_v54 = vpop.trf.xlu0 }
  0xe7   : > { %1327 = vmatmul.mubr.msk.f32.gmra.mrb[20].mxu0 %vm355_vm0, %v280_v54  ;;  %1375 = vmatmul.mubr.msk.f32.gmra.mrb[20].mxu1 %vm355_vm0, %v344_v53 }
  0xea   : > { %v345_v55 = vpop.trf.xlu1  ;;  %v281_v56 = vpop.trf.xlu0 }
  0xeb   : > { %1329 = vmatprep.mubr.msk.f32.mxu0 %vm355_vm0, %v281_v56  ;;  %1377 = vmatprep.mubr.msk.f32.mxu1 %vm355_vm0, %v345_v55 }
  0xee   : > { %v346_v57 = vpop.trf.xlu1  ;;  %v282_v58 = vpop.trf.xlu0 }
  0xef   : > { %1330 = vmatmul.mubr.msk.f32.gmra.mrb[22].mxu0 %vm355_vm0, %v282_v58  ;;  %1378 = vmatmul.mubr.msk.f32.gmra.mrb[22].mxu1 %vm355_vm0, %v346_v57 }
  0xf2   : > { %v347_v59 = vpop.trf.xlu1  ;;  %v283_v60 = vpop.trf.xlu0 }
  0xf3   : > { %1332 = vmatprep.mubr.msk.f32.mxu0 %vm355_vm0, %v283_v60  ;;  %1380 = vmatprep.mubr.msk.f32.mxu1 %vm355_vm0, %v347_v59 }
  0xf6   : > { %v348_v61 = vpop.trf.xlu1  ;;  %v284_v62 = vpop.trf.xlu0 }
  0xf7   : > { %1333 = vmatmul.mubr.msk.f32.gmra.mrb[24].mxu0 %vm355_vm0, %v284_v62  ;;  %1381 = vmatmul.mubr.msk.f32.gmra.mrb[24].mxu1 %vm355_vm0, %v348_v61 }
  0xfa   : > { %v349_v63 = vpop.trf.xlu1  ;;  %v285_v0 = vpop.trf.xlu0 }
  0xfb   : > { %1335 = vmatprep.mubr.msk.f32.mxu0 %vm355_vm0, %v285_v0  ;;  %1383 = vmatprep.mubr.msk.f32.mxu1 %vm355_vm0, %v349_v63 }
  0xfe   : > { %v350_v1 = vpop.trf.xlu1  ;;  %v286_v2 = vpop.trf.xlu0 }
  0xff   : > { %1336 = vmatmul.mubr.msk.f32.gmra.mrb[26].mxu0 %vm355_vm0, %v286_v2  ;;  %1384 = vmatmul.mubr.msk.f32.gmra.mrb[26].mxu1 %vm355_vm0, %v350_v1 }
 0x102   : > { %v351_v3 = vpop.trf.xlu1  ;;  %v287_v4 = vpop.trf.xlu0 }
 0x103   : > { %1338 = vmatprep.mubr.msk.f32.mxu0 %vm355_vm0, %v287_v4  ;;  %1386 = vmatprep.mubr.msk.f32.mxu1 %vm355_vm0, %v351_v3 }
 0x106   : > { %v352_v5 = vpop.trf.xlu1  ;;  %v288_v6 = vpop.trf.xlu0 }
 0x107   : > { %1339 = vmatmul.mubr.msk.f32.gmra.mrb[28].mxu0 %vm355_vm0, %v288_v6  ;;  %1387 = vmatmul.mubr.msk.f32.gmra.mrb[28].mxu1 %vm355_vm0, %v352_v5 }
 0x10a   : > { %v353_v7 = vpop.trf.xlu1  ;;  %v289_v8 = vpop.trf.xlu0 }
 0x10b   : > { %1341 = vmatprep.mubr.msk.f32.mxu0 %vm355_vm0, %v289_v8  ;;  %1389 = vmatprep.mubr.msk.f32.mxu1 %vm355_vm0, %v353_v7 }
 0x10e   : > { %v354_v9 = vpop.trf.xlu1  ;;  %v290_v10 = vpop.trf.xlu0 }
 0x10f   : > { %1342 = vmatmul.mubr.msk.f32.gmra.mrb[30].mxu0 %vm355_vm0, %v290_v10  ;;  %1390 = vmatmul.mubr.msk.f32.gmra.mrb[30].mxu1 %vm355_vm0, %v354_v9 }
 0x16a   : > { %v1298_v12 = vpop.f32.mrb[0].mxu0  ;;  %v1346_v13 = vpop.f32.mrb[0].mxu1 }
 0x16b   : > { %v620_v14 = vadd.f32 %v1298_v12, %v1564_v11  ;;  %v780_v15 = vadd.f32 %v1346_v13, %v1564_v11  ;;  %v614_v16 = vpop.f32.mrb[1].mxu0  ;;  %v774_v17 = vpop.f32.mrb[1].mxu1 }
 0x16c   : > { %v615_v18 = vadd.f32 %v1564_v11, %v614_v16  ;;  %v775_v19 = vadd.f32 %v1564_v11, %v774_v17 }
 0x16d   : > { %v934_v20 = vmax.f32 %v620_v14, 0.0  ;;  %v966_v21 = vmax.f32 %v780_v15, 0.0 }
 0x16e   : > { %v933_v22 = vmax.f32 %v615_v18, 0.0  ;;  %v965_v23 = vmax.f32 %v775_v19, 0.0 }
 0x16f   : > { %998 = vst [vmem:[%s1572_s29 + $0x8] sm:$0xff] %v934_v20  ;;  %1030 = vst [vmem:[%s1572_s29 + $0x108] sm:$0xff] %v966_v21 }
 0x170   : > { %997 = vst [vmem:[%s1572_s29] sm:$0xff] %v933_v22  ;;  %1029 = vst [vmem:[%s1572_s29 + $0x100] sm:$0xff] %v965_v23 }
 0x172   : > { %v1301_v24 = vpop.f32.mrb[2].mxu0  ;;  %v1349_v25 = vpop.f32.mrb[2].mxu1 }
 0x173   : > { %v630_v26 = vadd.f32 %v1301_v24, %v1564_v11  ;;  %v790_v27 = vadd.f32 %v1349_v25, %v1564_v11  ;;  %v624_v28 = vpop.f32.mrb[3].mxu0  ;;  %v784_v29 = vpop.f32.mrb[3].mxu1 }
 0x174   : > { %v625_v30 = vadd.f32 %v1564_v11, %v624_v28  ;;  %v785_v31 = vadd.f32 %v1564_v11, %v784_v29 }
 0x175   : > { %v936_v32 = vmax.f32 %v630_v26, 0.0  ;;  %v968_v33 = vmax.f32 %v790_v27, 0.0 }
 0x176   : > { %v935_v34 = vmax.f32 %v625_v30, 0.0  ;;  %v967_v35 = vmax.f32 %v785_v31, 0.0 }
 0x177   : > { %1000 = vst [vmem:[%s1572_s29 + $0x18] sm:$0xff] %v936_v32  ;;  %1032 = vst [vmem:[%s1572_s29 + $0x118] sm:$0xff] %v968_v33 }
 0x178   : > { %999 = vst [vmem:[%s1572_s29 + $0x10] sm:$0xff] %v935_v34  ;;  %1031 = vst [vmem:[%s1572_s29 + $0x110] sm:$0xff] %v967_v35 }
 0x17a   : > { %v1304_v36 = vpop.f32.mrb[4].mxu0  ;;  %v1352_v37 = vpop.f32.mrb[4].mxu1 }
 0x17b   : > { %v640_v38 = vadd.f32 %v1304_v36, %v1564_v11  ;;  %v800_v39 = vadd.f32 %v1352_v37, %v1564_v11  ;;  %v634_v40 = vpop.f32.mrb[5].mxu0  ;;  %v794_v41 = vpop.f32.mrb[5].mxu1 }
 0x17c   : > { %v635_v42 = vadd.f32 %v1564_v11, %v634_v40  ;;  %v795_v43 = vadd.f32 %v1564_v11, %v794_v41 }
 0x17d   : > { %v938_v44 = vmax.f32 %v640_v38, 0.0  ;;  %v970_v45 = vmax.f32 %v800_v39, 0.0 }
 0x17e   : > { %v937_v46 = vmax.f32 %v635_v42, 0.0  ;;  %v969_v47 = vmax.f32 %v795_v43, 0.0 }
 0x17f   : > { %1002 = vst [vmem:[%s1572_s29 + $0x28] sm:$0xff] %v938_v44  ;;  %1034 = vst [vmem:[%s1572_s29 + $0x128] sm:$0xff] %v970_v45 }
 0x180   : > { %1001 = vst [vmem:[%s1572_s29 + $0x20] sm:$0xff] %v937_v46  ;;  %1033 = vst [vmem:[%s1572_s29 + $0x120] sm:$0xff] %v969_v47 }
 0x182   : > { %v1307_v48 = vpop.f32.mrb[6].mxu0  ;;  %v1355_v49 = vpop.f32.mrb[6].mxu1 }
 0x183   : > { %v650_v50 = vadd.f32 %v1307_v48, %v1564_v11  ;;  %v810_v51 = vadd.f32 %v1355_v49, %v1564_v11  ;;  %v644_v52 = vpop.f32.mrb[7].mxu0  ;;  %v804_v53 = vpop.f32.mrb[7].mxu1 }
 0x184   : > { %v645_v54 = vadd.f32 %v1564_v11, %v644_v52  ;;  %v805_v55 = vadd.f32 %v1564_v11, %v804_v53 }
 0x185   : > { %v940_v56 = vmax.f32 %v650_v50, 0.0  ;;  %v972_v57 = vmax.f32 %v810_v51, 0.0 }
 0x186   : > { %v939_v58 = vmax.f32 %v645_v54, 0.0  ;;  %v971_v59 = vmax.f32 %v805_v55, 0.0 }
 0x187   : > { %1004 = vst [vmem:[%s1572_s29 + $0x38] sm:$0xff] %v940_v56  ;;  %1036 = vst [vmem:[%s1572_s29 + $0x138] sm:$0xff] %v972_v57 }
 0x188   : > { %1003 = vst [vmem:[%s1572_s29 + $0x30] sm:$0xff] %v939_v58  ;;  %1035 = vst [vmem:[%s1572_s29 + $0x130] sm:$0xff] %v971_v59 }
 0x18a   : > { %v1310_v60 = vpop.f32.mrb[8].mxu0  ;;  %v1358_v61 = vpop.f32.mrb[8].mxu1 }
 0x18b   : > { %v660_v62 = vadd.f32 %v1310_v60, %v1564_v11  ;;  %v820_v63 = vadd.f32 %v1358_v61, %v1564_v11  ;;  %v654_v0 = vpop.f32.mrb[9].mxu0  ;;  %v814_v1 = vpop.f32.mrb[9].mxu1 }
 0x18c   : > { %v655_v2 = vadd.f32 %v1564_v11, %v654_v0  ;;  %v815_v3 = vadd.f32 %v1564_v11, %v814_v1 }
 0x18d   : > { %v942_v4 = vmax.f32 %v660_v62, 0.0  ;;  %v974_v5 = vmax.f32 %v820_v63, 0.0 }
 0x18e   : > { %v941_v6 = vmax.f32 %v655_v2, 0.0  ;;  %v973_v7 = vmax.f32 %v815_v3, 0.0 }
 0x18f   : > { %1006 = vst [vmem:[%s1572_s29 + $0x48] sm:$0xff] %v942_v4  ;;  %1038 = vst [vmem:[%s1572_s29 + $0x148] sm:$0xff] %v974_v5 }
 0x190   : > { %1005 = vst [vmem:[%s1572_s29 + $0x40] sm:$0xff] %v941_v6  ;;  %1037 = vst [vmem:[%s1572_s29 + $0x140] sm:$0xff] %v973_v7 }
 0x192   : > { %v1313_v8 = vpop.f32.mrb[10].mxu0  ;;  %v1361_v9 = vpop.f32.mrb[10].mxu1 }
 0x193   : > { %v670_v10 = vadd.f32 %v1313_v8, %v1564_v11  ;;  %v830_v12 = vadd.f32 %v1361_v9, %v1564_v11  ;;  %v664_v13 = vpop.f32.mrb[11].mxu0  ;;  %v824_v14 = vpop.f32.mrb[11].mxu1 }
 0x194   : > { %v665_v15 = vadd.f32 %v1564_v11, %v664_v13  ;;  %v825_v16 = vadd.f32 %v1564_v11, %v824_v14 }
 0x195   : > { %v944_v17 = vmax.f32 %v670_v10, 0.0  ;;  %v976_v18 = vmax.f32 %v830_v12, 0.0 }
 0x196   : > { %v943_v19 = vmax.f32 %v665_v15, 0.0  ;;  %v975_v20 = vmax.f32 %v825_v16, 0.0 }
 0x197   : > { %1008 = vst [vmem:[%s1572_s29 + $0x58] sm:$0xff] %v944_v17  ;;  %1040 = vst [vmem:[%s1572_s29 + $0x158] sm:$0xff] %v976_v18 }
 0x198   : > { %1007 = vst [vmem:[%s1572_s29 + $0x50] sm:$0xff] %v943_v19  ;;  %1039 = vst [vmem:[%s1572_s29 + $0x150] sm:$0xff] %v975_v20 }
 0x19a   : > { %v1316_v21 = vpop.f32.mrb[12].mxu0  ;;  %v1364_v22 = vpop.f32.mrb[12].mxu1 }
 0x19b   : > { %v680_v23 = vadd.f32 %v1316_v21, %v1564_v11  ;;  %v840_v24 = vadd.f32 %v1364_v22, %v1564_v11  ;;  %v674_v25 = vpop.f32.mrb[13].mxu0  ;;  %v834_v26 = vpop.f32.mrb[13].mxu1 }
 0x19c   : > { %v675_v27 = vadd.f32 %v1564_v11, %v674_v25  ;;  %v835_v28 = vadd.f32 %v1564_v11, %v834_v26 }
 0x19d   : > { %v946_v29 = vmax.f32 %v680_v23, 0.0  ;;  %v978_v30 = vmax.f32 %v840_v24, 0.0 }
 0x19e   : > { %v945_v31 = vmax.f32 %v675_v27, 0.0  ;;  %v977_v32 = vmax.f32 %v835_v28, 0.0 }
 0x19f   : > { %1010 = vst [vmem:[%s1572_s29 + $0x68] sm:$0xff] %v946_v29  ;;  %1042 = vst [vmem:[%s1572_s29 + $0x168] sm:$0xff] %v978_v30 }
 0x1a0   : > { %1009 = vst [vmem:[%s1572_s29 + $0x60] sm:$0xff] %v945_v31  ;;  %1041 = vst [vmem:[%s1572_s29 + $0x160] sm:$0xff] %v977_v32 }
 0x1a2   : > { %v1319_v33 = vpop.f32.mrb[14].mxu0  ;;  %v1367_v34 = vpop.f32.mrb[14].mxu1 }
 0x1a3   : > { %v690_v35 = vadd.f32 %v1319_v33, %v1564_v11  ;;  %v850_v36 = vadd.f32 %v1367_v34, %v1564_v11  ;;  %v684_v37 = vpop.f32.mrb[15].mxu0  ;;  %v844_v38 = vpop.f32.mrb[15].mxu1 }
 0x1a4   : > { %v685_v39 = vadd.f32 %v1564_v11, %v684_v37  ;;  %v845_v40 = vadd.f32 %v1564_v11, %v844_v38 }
 0x1a5   : > { %v948_v41 = vmax.f32 %v690_v35, 0.0  ;;  %v980_v42 = vmax.f32 %v850_v36, 0.0 }
 0x1a6   : > { %v947_v43 = vmax.f32 %v685_v39, 0.0  ;;  %v979_v44 = vmax.f32 %v845_v40, 0.0 }
 0x1a7   : > { %1012 = vst [vmem:[%s1572_s29 + $0x78] sm:$0xff] %v948_v41  ;;  %1044 = vst [vmem:[%s1572_s29 + $0x178] sm:$0xff] %v980_v42 }
 0x1a8   : > { %1011 = vst [vmem:[%s1572_s29 + $0x70] sm:$0xff] %v947_v43  ;;  %1043 = vst [vmem:[%s1572_s29 + $0x170] sm:$0xff] %v979_v44 }
 0x1aa   : > { %v1322_v45 = vpop.f32.mrb[16].mxu0  ;;  %v1370_v46 = vpop.f32.mrb[16].mxu1 }
 0x1ab   : > { %v700_v47 = vadd.f32 %v1322_v45, %v1564_v11  ;;  %v860_v48 = vadd.f32 %v1370_v46, %v1564_v11  ;;  %v694_v49 = vpop.f32.mrb[17].mxu0  ;;  %v854_v50 = vpop.f32.mrb[17].mxu1 }
 0x1ac   : > { %v695_v51 = vadd.f32 %v1564_v11, %v694_v49  ;;  %v855_v52 = vadd.f32 %v1564_v11, %v854_v50 }
 0x1ad   : > { %v950_v53 = vmax.f32 %v700_v47, 0.0  ;;  %v982_v54 = vmax.f32 %v860_v48, 0.0 }
 0x1ae   : > { %v949_v55 = vmax.f32 %v695_v51, 0.0  ;;  %v981_v56 = vmax.f32 %v855_v52, 0.0 }
 0x1af   : > { %1014 = vst [vmem:[%s1572_s29 + $0x88] sm:$0xff] %v950_v53  ;;  %1046 = vst [vmem:[%s1572_s29 + $0x188] sm:$0xff] %v982_v54 }
 0x1b0   : > { %1013 = vst [vmem:[%s1572_s29 + $0x80] sm:$0xff] %v949_v55  ;;  %1045 = vst [vmem:[%s1572_s29 + $0x180] sm:$0xff] %v981_v56 }
 0x1b2   : > { %v1325_v57 = vpop.f32.mrb[18].mxu0  ;;  %v1373_v58 = vpop.f32.mrb[18].mxu1 }
 0x1b3   : > { %v710_v59 = vadd.f32 %v1325_v57, %v1564_v11  ;;  %v870_v60 = vadd.f32 %v1373_v58, %v1564_v11  ;;  %v704_v61 = vpop.f32.mrb[19].mxu0  ;;  %v864_v62 = vpop.f32.mrb[19].mxu1 }
 0x1b4   : > { %v705_v63 = vadd.f32 %v1564_v11, %v704_v61  ;;  %v865_v0 = vadd.f32 %v1564_v11, %v864_v62 }
 0x1b5   : > { %v952_v1 = vmax.f32 %v710_v59, 0.0  ;;  %v984_v2 = vmax.f32 %v870_v60, 0.0 }
 0x1b6   : > { %v951_v3 = vmax.f32 %v705_v63, 0.0  ;;  %v983_v4 = vmax.f32 %v865_v0, 0.0 }
 0x1b7   : > { %1016 = vst [vmem:[%s1572_s29 + $0x98] sm:$0xff] %v952_v1  ;;  %1048 = vst [vmem:[%s1572_s29 + $0x198] sm:$0xff] %v984_v2 }
 0x1b8   : > { %1015 = vst [vmem:[%s1572_s29 + $0x90] sm:$0xff] %v951_v3  ;;  %1047 = vst [vmem:[%s1572_s29 + $0x190] sm:$0xff] %v983_v4 }
 0x1ba   : > { %v1328_v5 = vpop.f32.mrb[20].mxu0  ;;  %v1376_v6 = vpop.f32.mrb[20].mxu1 }
 0x1bb   : > { %v720_v7 = vadd.f32 %v1328_v5, %v1564_v11  ;;  %v880_v8 = vadd.f32 %v1376_v6, %v1564_v11  ;;  %v714_v9 = vpop.f32.mrb[21].mxu0  ;;  %v874_v10 = vpop.f32.mrb[21].mxu1 }
 0x1bc   : > { %v715_v12 = vadd.f32 %v1564_v11, %v714_v9  ;;  %v875_v13 = vadd.f32 %v1564_v11, %v874_v10 }
 0x1bd   : > { %v954_v14 = vmax.f32 %v720_v7, 0.0  ;;  %v986_v15 = vmax.f32 %v880_v8, 0.0 }
 0x1be   : > { %v953_v16 = vmax.f32 %v715_v12, 0.0  ;;  %v985_v17 = vmax.f32 %v875_v13, 0.0 }
 0x1bf   : > { %1018 = vst [vmem:[%s1572_s29 + $0xa8] sm:$0xff] %v954_v14  ;;  %1050 = vst [vmem:[%s1572_s29 + $0x1a8] sm:$0xff] %v986_v15 }
 0x1c0   : > { %1017 = vst [vmem:[%s1572_s29 + $0xa0] sm:$0xff] %v953_v16  ;;  %1049 = vst [vmem:[%s1572_s29 + $0x1a0] sm:$0xff] %v985_v17 }
 0x1c2   : > { %v1331_v18 = vpop.f32.mrb[22].mxu0  ;;  %v1379_v19 = vpop.f32.mrb[22].mxu1 }
 0x1c3   : > { %v730_v20 = vadd.f32 %v1331_v18, %v1564_v11  ;;  %v890_v21 = vadd.f32 %v1379_v19, %v1564_v11  ;;  %v724_v22 = vpop.f32.mrb[23].mxu0  ;;  %v884_v23 = vpop.f32.mrb[23].mxu1 }
 0x1c4   : > { %v725_v24 = vadd.f32 %v1564_v11, %v724_v22  ;;  %v885_v25 = vadd.f32 %v1564_v11, %v884_v23 }
 0x1c5   : > { %v956_v26 = vmax.f32 %v730_v20, 0.0  ;;  %v988_v27 = vmax.f32 %v890_v21, 0.0 }
 0x1c6   : > { %v955_v28 = vmax.f32 %v725_v24, 0.0  ;;  %v987_v29 = vmax.f32 %v885_v25, 0.0 }
 0x1c7   : > { %1020 = vst [vmem:[%s1572_s29 + $0xb8] sm:$0xff] %v956_v26  ;;  %1052 = vst [vmem:[%s1572_s29 + $0x1b8] sm:$0xff] %v988_v27 }
 0x1c8   : > { %1019 = vst [vmem:[%s1572_s29 + $0xb0] sm:$0xff] %v955_v28  ;;  %1051 = vst [vmem:[%s1572_s29 + $0x1b0] sm:$0xff] %v987_v29 }
 0x1ca   : > { %v1334_v30 = vpop.f32.mrb[24].mxu0  ;;  %v1382_v31 = vpop.f32.mrb[24].mxu1 }
 0x1cb   : > { %v740_v32 = vadd.f32 %v1334_v30, %v1564_v11  ;;  %v900_v33 = vadd.f32 %v1382_v31, %v1564_v11  ;;  %v734_v34 = vpop.f32.mrb[25].mxu0  ;;  %v894_v35 = vpop.f32.mrb[25].mxu1 }
 0x1cc   : > { %v735_v36 = vadd.f32 %v1564_v11, %v734_v34  ;;  %v895_v37 = vadd.f32 %v1564_v11, %v894_v35 }
 0x1cd   : > { %v958_v38 = vmax.f32 %v740_v32, 0.0  ;;  %v990_v39 = vmax.f32 %v900_v33, 0.0 }
 0x1ce   : > { %v957_v40 = vmax.f32 %v735_v36, 0.0  ;;  %v989_v41 = vmax.f32 %v895_v37, 0.0 }
 0x1cf   : > { %1022 = vst [vmem:[%s1572_s29 + $0xc8] sm:$0xff] %v958_v38  ;;  %1054 = vst [vmem:[%s1572_s29 + $0x1c8] sm:$0xff] %v990_v39 }
 0x1d0   : > { %1021 = vst [vmem:[%s1572_s29 + $0xc0] sm:$0xff] %v957_v40  ;;  %1053 = vst [vmem:[%s1572_s29 + $0x1c0] sm:$0xff] %v989_v41 }
 0x1d2   : > { %v1337_v42 = vpop.f32.mrb[26].mxu0  ;;  %v1385_v43 = vpop.f32.mrb[26].mxu1 }
 0x1d3   : > { %v750_v44 = vadd.f32 %v1337_v42, %v1564_v11  ;;  %v910_v45 = vadd.f32 %v1385_v43, %v1564_v11  ;;  %v744_v46 = vpop.f32.mrb[27].mxu0  ;;  %v904_v47 = vpop.f32.mrb[27].mxu1 }
 0x1d4   : > { %v745_v48 = vadd.f32 %v1564_v11, %v744_v46  ;;  %v905_v49 = vadd.f32 %v1564_v11, %v904_v47 }
 0x1d5   : > { %v960_v50 = vmax.f32 %v750_v44, 0.0  ;;  %v992_v51 = vmax.f32 %v910_v45, 0.0 }
 0x1d6   : > { %v959_v52 = vmax.f32 %v745_v48, 0.0  ;;  %v991_v53 = vmax.f32 %v905_v49, 0.0 }
 0x1d7   : > { %1024 = vst [vmem:[%s1572_s29 + $0xd8] sm:$0xff] %v960_v50  ;;  %1056 = vst [vmem:[%s1572_s29 + $0x1d8] sm:$0xff] %v992_v51 }
 0x1d8   : > { %1023 = vst [vmem:[%s1572_s29 + $0xd0] sm:$0xff] %v959_v52  ;;  %1055 = vst [vmem:[%s1572_s29 + $0x1d0] sm:$0xff] %v991_v53 }
 0x1da   : > { %v1340_v54 = vpop.f32.mrb[28].mxu0  ;;  %v1388_v55 = vpop.f32.mrb[28].mxu1 }
 0x1db   : > { %v760_v56 = vadd.f32 %v1340_v54, %v1564_v11  ;;  %v920_v57 = vadd.f32 %v1388_v55, %v1564_v11  ;;  %v754_v58 = vpop.f32.mrb[29].mxu0  ;;  %v914_v59 = vpop.f32.mrb[29].mxu1 }
 0x1dc   : > { %v755_v60 = vadd.f32 %v1564_v11, %v754_v58  ;;  %v915_v61 = vadd.f32 %v1564_v11, %v914_v59 }
 0x1dd   : > { %v962_v62 = vmax.f32 %v760_v56, 0.0  ;;  %v994_v63 = vmax.f32 %v920_v57, 0.0 }
 0x1de   : > { %v961_v0 = vmax.f32 %v755_v60, 0.0  ;;  %v993_v1 = vmax.f32 %v915_v61, 0.0 }
 0x1df   : > { %1026 = vst [vmem:[%s1572_s29 + $0xe8] sm:$0xff] %v962_v62  ;;  %1058 = vst [vmem:[%s1572_s29 + $0x1e8] sm:$0xff] %v994_v63 }
 0x1e0   : > { %1025 = vst [vmem:[%s1572_s29 + $0xe0] sm:$0xff] %v961_v0  ;;  %1057 = vst [vmem:[%s1572_s29 + $0x1e0] sm:$0xff] %v993_v1 }
 0x1e2   : > { %v1343_v2 = vpop.f32.mrb[30].mxu0  ;;  %v1391_v3 = vpop.f32.mrb[30].mxu1 }
 0x1e3   : > { %v770_v4 = vadd.f32 %v1343_v2, %v1564_v11  ;;  %v930_v5 = vadd.f32 %v1391_v3, %v1564_v11  ;;  %v764_v6 = vpop.f32.mrb[31].mxu0  ;;  %v924_v7 = vpop.f32.mrb[31].mxu1 }
 0x1e4   : > { %v765_v8 = vadd.f32 %v1564_v11, %v764_v6  ;;  %v925_v9 = vadd.f32 %v1564_v11, %v924_v7 }
 0x1e5   : > { %v964_v10 = vmax.f32 %v770_v4, 0.0  ;;  %v996_v12 = vmax.f32 %v930_v5, 0.0 }
 0x1e6   : > { %v963_v13 = vmax.f32 %v765_v8, 0.0  ;;  %v995_v14 = vmax.f32 %v925_v9, 0.0 }
 0x1e7   : > { %1028 = vst [vmem:[%s1572_s29 + $0xf8] sm:$0xff] %v964_v10  ;;  %1060 = vst [vmem:[%s1572_s29 + $0x1f8] sm:$0xff] %v996_v12 }
 0x1e8   : > { %1027 = vst [vmem:[%s1572_s29 + $0xf0] sm:$0xff] %v963_v13  ;;  %1059 = vst [vmem:[%s1572_s29 + $0x1f0] sm:$0xff] %v995_v14 }
 0x1e9 PF: > { %s13_s14 = sadd.s32 1, %s1445_s14   ;;  %s1713_s12 = smov %s1441_s13 }
 0x1ea   : > { %p10_p5 = scmp.ge.s32.totalorder %s13_s14, 4   ;;  %s1714_s13 = smov %s1716_s15 }
 0x1ec   :  { %12 = sbr.rel (!%p10_p5) target bundleno = 2 (0x2), region = 62 }

</bundles_post_ra>
